<compile_context>
chip_gen: v7x
topology: tpu7x:2x2x1
jax: 0.10.0
libtpu: 0.0.40
codegen_flags: <defaults>
</compile_context>

<pallas_src>
import jax
import jax.numpy as jnp
from jax import lax
from jax.experimental import pallas as pl
from jax.experimental.pallas import tpu as pltpu


def _round_up(x, m):
    return ((x + m - 1) // m) * m


def _sigmoid(x):
    # Explicit exp/reciprocal form: trivially lowerable, runs on the EUP.
    return 1.0 / (1.0 + jnp.exp(-x))


def _pick_time_chunk(seq_len, batch_p, emb_dim, budget_bytes=4 * 2**20,
                     max_chunk=32):
    """Largest time chunk <= max_chunk whose double-buffered bf16 stream fits
    the budget.  Prefer an exact divisor of seq_len (no tail masking)."""
    bytes_per_step = max(1, batch_p * emb_dim * 2)          # bf16
    cap = max(1, min(max_chunk, seq_len, budget_bytes // (2 * bytes_per_step)))
    best_div = 1
    for tc in range(cap, 0, -1):
        if seq_len % tc == 0:
            best_div = tc
            break
    # If the best divisor is pathologically small (e.g. prime seq_len), pad the
    # time axis instead and mask the tail chunk with a dynamic loop bound.
    return best_div if best_div * 2 >= cap else cap


def _make_lstm_kernel(seq_len, tc, bp, hg, packed, unroll):
    """Build the kernel body with all static sizes closed over.

    Ref shapes seen by the kernel:
      x_ref    : (Tc*Bp, E)   bf16   streamed chunk of time-major embeddings
      wih_ref  : (E, 4*Hg)    bf16   input-projection weights (gate packed)
      whh_ref  : (Sw, 4*Hg)   bf16   recurrent weights (rows >= H are zero)
      bias_ref : (1, 4*Hg)    f32    b_ih + b_hh (gate packed)
      wcls_ref : (Sw, Lp)     bf16   classifier weights (rows >= H are zero)
      bcls_ref : (1, Lp)      f32
      out_ref  : (Bp, Lp)     f32    logits of the last timestep
      xp_ref   : (Tc*Bp, 4*Hg) f32   scratch: per-chunk input projection
      h_ref/c_ref : (Bp, Sw)  f32    scratch: state carried across grid steps
    """
    gate_w = 4 * hg

    def kernel(x_ref, wih_ref, whh_ref, bias_ref, wcls_ref, bcls_ref,
               out_ref, xp_ref, h_ref, c_ref):
        step_i = pl.program_id(0)
        n_steps = pl.num_programs(0)

        @pl.when(step_i == 0)
        def _init():
            h_ref[...] = jnp.zeros_like(h_ref)
            c_ref[...] = jnp.zeros_like(c_ref)

        # --- Chunk-wide input projection: one MXU GEMM, no h dependence, so
        #     it sits ahead of (and overlaps with) the serial recurrence. ----
        xp_ref[...] = (
            jnp.dot(x_ref[...], wih_ref[...],
                    preferred_element_type=jnp.float32)
            + bias_ref[...])

        whh = whh_ref[...]                       # hoisted out of the loop

        if packed:
            lane = lax.broadcasted_iota(jnp.int32, (bp, gate_w), 1)
            is_g_block = (lane >= 2 * hg) & (lane < 3 * hg)

        def step(t, carry):
            h, c = carry                         # (Bp, Sw) f32
            row = pl.multiple_of(t * bp, bp)
            gates = xp_ref[pl.ds(row, bp), :] + jnp.dot(
                h.astype(jnp.bfloat16), whh,
                preferred_element_type=jnp.float32)      # (Bp, 4*Hg) f32
            if packed:
                # PyTorch gate order i|f|g|o packed into 4*Hg = 128 lanes.
                act = jnp.where(is_g_block, jnp.tanh(gates), _sigmoid(gates))
                i_a = act                                   # i at lanes [0,Hg)
                # pltpu.roll == jnp.roll (out[j] = in[(j-shift) % n]), so a
                # shift of (4-k)*Hg brings gate block k to lanes [0, Hg).
                f_a = pltpu.roll(act, 3 * hg, axis=1)
                g_a = pltpu.roll(act, 2 * hg, axis=1)
                o_a = pltpu.roll(act, 1 * hg, axis=1)
                c_new = f_a * c + i_a * g_a
                h_new = o_a * jnp.tanh(c_new)
                # Lanes >= H of h/c hold bounded don't-care values; they only
                # ever multiply all-zero rows of whh/wcls, so the real lanes
                # match the unpacked recurrence exactly.
            else:
                # Per-gate 128-lane padding: slices are vreg-aligned.
                i_a = _sigmoid(gates[:, 0 * hg:1 * hg])
                f_a = _sigmoid(gates[:, 1 * hg:2 * hg])
                g_a = jnp.tanh(gates[:, 2 * hg:3 * hg])
                o_a = _sigmoid(gates[:, 3 * hg:4 * hg])
                c_new = f_a * c + i_a * g_a
                h_new = o_a * jnp.tanh(c_new)
            return h_new, c_new

        h0 = h_ref[...]
        c0 = c_ref[...]
        if seq_len % tc == 0:
            h_last, c_last = lax.fori_loop(0, tc, step, (h0, c0),
                                           unroll=unroll)
        else:
            # Tail chunk of a padded time axis: run only the valid timesteps.
            n_valid = jnp.minimum(tc, seq_len - step_i * tc)
            h_last, c_last = lax.fori_loop(0, n_valid, step, (h0, c0))
        h_ref[...] = h_last
        c_ref[...] = c_last

        @pl.when(step_i == n_steps - 1)
        def _finalize():
            out_ref[...] = (
                jnp.dot(h_last.astype(jnp.bfloat16), wcls_ref[...],
                        preferred_element_type=jnp.float32)
                + bcls_ref[...])

    return kernel


def comments_classifier_forward(tokens, params):
    """tokens: (B, T) int32 token ids.  Returns logits (B, num_labels)."""
    emb_table = params["emb"]            # (V, E), row 0 zeroed (padding_idx=0)
    w_ih = params["w_ih"]                # (4H, E)  PyTorch layout, gates i|f|g|o
    w_hh = params["w_hh"]                # (4H, H)
    b_ih = params["b_ih"]                # (4H,)
    b_hh = params["b_hh"]                # (4H,)
    w_cls = params["w_cls"]              # (L, H)
    b_cls = params["b_cls"]              # (L,)

    B, T = tokens.shape
    E = emb_table.shape[1]
    H = w_hh.shape[1]
    L = w_cls.shape[0]
    f32, bf16 = jnp.float32, jnp.bfloat16

    # ---- TPU-friendly padded sizes -------------------------------------
    # Whole batch stays in one per-step matmul (fills MXU rows for real B).
    Bp = _round_up(max(B, 8), 8)
    packed = 4 * H <= 128                # pack gates into one 128-lane vreg
    Hg = 32 if packed else _round_up(H, 128)   # per-gate lane block
    G = 4 * Hg                           # gate lane width
    Sw = G if packed else Hg             # h/c state lane width
    Lp = _round_up(max(L, 128), 128)     # lane-dense classifier store

    # ---- Parameter packing (zero padding is provably inert) -------------
    def pack_gates(w, in_dim, in_pad):
        # (4H, in_dim) stacked [i; f; g; o]  ->  (in_pad, 4*Hg), transposed.
        x = w.astype(f32).reshape(4, H, in_dim)
        x = jnp.pad(x, ((0, 0), (0, Hg - H), (0, in_pad - in_dim)))
        return x.reshape(4 * Hg, in_pad).T

    wih_t = pack_gates(w_ih, E, E).astype(bf16)            # (E, G)
    whh_t = pack_gates(w_hh, H, Sw).astype(bf16)           # (Sw, G)
    bias_p = jnp.pad((b_ih + b_hh).astype(f32).reshape(4, H),
                     ((0, 0), (0, Hg - H))).reshape(1, G)  # (1, G) f32

    wcls_t = jnp.pad(w_cls.astype(f32),
                     ((0, Lp - L), (0, Sw - H))).T.astype(bf16)   # (Sw, Lp)
    bcls_p = jnp.pad(b_cls.astype(f32), (0, Lp - L)).reshape(1, Lp)

    # ---- Embed in time-major layout; stream the 16x-narrower x_emb ------
    tokens_p = jnp.pad(tokens, ((0, Bp - B), (0, 0)))      # pad id = 0
    x_flat = emb_table.astype(bf16)[tokens_p.T].reshape(T * Bp, E)

    Tc = _pick_time_chunk(T, Bp, E)
    n_chunks = -(-T // Tc)
    Tp = n_chunks * Tc
    if Tp != T:
        x_flat = jnp.pad(x_flat, ((0, (Tp - T) * Bp), (0, 0)))

    # ---- Explicit VMEM budget (v5e default 16 MiB; v7x has 64 MiB) ------
    needed = (2 * Tc * Bp * E * 2                    # double-buffered x stream
              + 2 * (E * G + Sw * G + Sw * Lp) * 2   # resident bf16 weights
              + 2 * (G + Lp) * 4                     # biases
              + 2 * Bp * Lp * 4                      # output block
              + (Tc * Bp * G + 2 * Bp * Sw) * 4)     # scratch
    vmem_limit = int(min(max(2 * needed, 16 * 2**20), 48 * 2**20))

    kernel = _make_lstm_kernel(T, Tc, Bp, Hg, packed, min(Tc, 8))

    grid_spec = pltpu.PrefetchScalarGridSpec(
        num_scalar_prefetch=0,
        grid=(n_chunks,),
        in_specs=[
            pl.BlockSpec((Tc * Bp, E), lambda i: (i, 0)),   # streamed x chunk
            pl.BlockSpec((E, G), lambda i: (0, 0)),         # resident weights
            pl.BlockSpec((Sw, G), lambda i: (0, 0)),
            pl.BlockSpec((1, G), lambda i: (0, 0)),
            pl.BlockSpec((Sw, Lp), lambda i: (0, 0)),
            pl.BlockSpec((1, Lp), lambda i: (0, 0)),
        ],
        out_specs=pl.BlockSpec((Bp, Lp), lambda i: (0, 0)),
        scratch_shapes=[
            pltpu.VMEM((Tc * Bp, G), f32),   # per-chunk input projection
            pltpu.VMEM((Bp, Sw), f32),       # h, carried across chunks
            pltpu.VMEM((Bp, Sw), f32),       # c, carried across chunks
        ],
    )
    logits_p = pl.pallas_call(
        kernel,
        out_shape=jax.ShapeDtypeStruct((Bp, Lp), f32),
        grid_spec=grid_spec,
        compiler_params=pltpu.CompilerParams(
            dimension_semantics=("arbitrary",),
            vmem_limit_bytes=vmem_limit),
    )(x_flat, wih_t, whh_t, bias_p, wcls_t, bcls_p)

    return logits_p[:B, :L]


def reference_forward(tokens, params):
    """Pure-JAX f32 reference of the PyTorch module (sanity check only)."""
    f32 = jnp.float32
    x = params["emb"].astype(f32)[tokens]                  # (B, T, E)
    w_ih, w_hh = params["w_ih"].astype(f32), params["w_hh"].astype(f32)
    b = (params["b_ih"] + params["b_hh"]).astype(f32)
    H = w_hh.shape[1]
    Bsz = tokens.shape[0]

    def step(carry, x_t):
        h, c = carry
        gates = x_t @ w_ih.T + h @ w_hh.T + b
        i = jax.nn.sigmoid(gates[:, 0 * H:1 * H])
        f = jax.nn.sigmoid(gates[:, 1 * H:2 * H])
        g = jnp.tanh(gates[:, 2 * H:3 * H])
        o = jax.nn.sigmoid(gates[:, 3 * H:4 * H])
        c = f * c + i * g
        h = o * jnp.tanh(c)
        return (h, c), None

    init = (jnp.zeros((Bsz, H), f32), jnp.zeros((Bsz, H), f32))
    (h_T, _), _ = lax.scan(step, init, jnp.swapaxes(x, 0, 1))
    return h_T @ params["w_cls"].astype(f32).T + params["b_cls"].astype(f32)


def init_params(key, vocab_size, embedding_size, rnn_hidden_size, num_labels):
    ks = jax.random.split(key, 7)
    E, H, L, V = embedding_size, rnn_hidden_size, num_labels, vocab_size
    emb = 0.1 * jax.random.normal(ks[0], (V, E), jnp.float32)
    emb = emb.at[0].set(0.0)  # padding_idx=0
    return {
        "emb": emb,
        "w_ih": 0.1 * jax.random.normal(ks[1], (4 * H, E), jnp.float32),
        "w_hh": 0.1 * jax.random.normal(ks[2], (4 * H, H), jnp.float32),
        "b_ih": 0.1 * jax.random.normal(ks[3], (4 * H,), jnp.float32),
        "b_hh": 0.1 * jax.random.normal(ks[4], (4 * H,), jnp.float32),
        "w_cls": 0.1 * jax.random.normal(ks[5], (L, H), jnp.float32),
        "b_cls": 0.1 * jax.random.normal(ks[6], (L,), jnp.float32),
    }


if __name__ == "__main__":
    # Small shapes consistent with the module: vocab=100, E=32, H=32, labels=4.
    VOCAB, EMB, HID, LABELS = 100, 32, 32, 4
    BATCH, SEQ = 2, 8

    key = jax.random.PRNGKey(0)
    kp, kx = jax.random.split(key)
    params = init_params(kp, VOCAB, EMB, HID, LABELS)
    tokens = jax.random.randint(kx, (BATCH, SEQ), 0, VOCAB, dtype=jnp.int32)

    fwd = jax.jit(comments_classifier_forward)
    logits = fwd(tokens, params)
    jax.block_until_ready(logits)
    assert logits.shape == (BATCH, LABELS)

    # Correctness vs. a pure-JAX f32 reference (kernel uses bf16 MXU operands,
    # so tolerances are AMP-level).
    ref = reference_forward(tokens, params)
    assert jnp.allclose(logits, ref, rtol=5e-2, atol=5e-2), (logits, ref)
    print("KERNEL_OK")
</pallas_src>

<mosaic_0001>
module attributes {stable_mosaic.version = 11 : i64} {
  func.func @kernel(%arg0: i32, %arg1: memref<64x32xbf16, #tpu.memory_space<vmem>>, %arg2: memref<32x128xbf16, #tpu.memory_space<vmem>>, %arg3: memref<128x128xbf16, #tpu.memory_space<vmem>>, %arg4: memref<1x128xf32, #tpu.memory_space<vmem>>, %arg5: memref<128x128xbf16, #tpu.memory_space<vmem>>, %arg6: memref<1x128xf32, #tpu.memory_space<vmem>>, %arg7: memref<8x128xf32, #tpu.memory_space<vmem>>, %arg8: memref<64x128xf32, #tpu.memory_space<vmem>>, %arg9: memref<8x128xf32, #tpu.memory_space<vmem>>, %arg10: memref<8x128xf32, #tpu.memory_space<vmem>>) attributes {dimension_semantics = [#tpu.dimension_semantics<arbitrary>], iteration_bounds = array<i64: 1>, scalar_prefetch = 0 : i64, scratch_operands = 3 : i64, tpu.core_type = #tpu.core_type<tc>, window_params = [{transform_indices = @transform_0, window_bounds = array<i64: 64, 32>}, {pipeline_mode = #tpu.pipeline_mode<synchronous>, transform_indices = @transform_1, window_bounds = array<i64: 32, 128>}, {pipeline_mode = #tpu.pipeline_mode<synchronous>, transform_indices = @transform_2, window_bounds = array<i64: 128, 128>}, {pipeline_mode = #tpu.pipeline_mode<synchronous>, transform_indices = @transform_3, window_bounds = array<i64: 1, 128>}, {pipeline_mode = #tpu.pipeline_mode<synchronous>, transform_indices = @transform_4, window_bounds = array<i64: 128, 128>}, {pipeline_mode = #tpu.pipeline_mode<synchronous>, transform_indices = @transform_5, window_bounds = array<i64: 1, 128>}, {pipeline_mode = #tpu.pipeline_mode<synchronous>, transform_indices = @transform_6, window_bounds = array<i64: 8, 128>}]} {
    %c0_i32 = arith.constant 0 : i32
    %0 = arith.cmpi eq, %arg0, %c0_i32 : i32
    %1 = arith.extui %0 : i1 to i32
    %c0_i32_0 = arith.constant 0 : i32
    %2 = arith.cmpi ne, %1, %c0_i32_0 : i32
    scf.if %2 {
      %cst_92 = arith.constant 0.000000e+00 : f32
      %216 = vector.broadcast %cst_92 : f32 to vector<8x128xf32>
      %c0_93 = arith.constant 0 : index
      %c0_94 = arith.constant 0 : index
      %217 = vector.load %arg9[%c0_93, %c0_94] : memref<8x128xf32, #tpu.memory_space<vmem>>, vector<8x128xf32>
      tpu.vector_store %arg9[%c0_93, %c0_94], %216 {strides = array<i32>} : memref<8x128xf32, #tpu.memory_space<vmem>>, vector<8x128xf32>,
      %cst_95 = arith.constant 0.000000e+00 : f32
      %218 = vector.broadcast %cst_95 : f32 to vector<8x128xf32>
      %c0_96 = arith.constant 0 : index
      %c0_97 = arith.constant 0 : index
      %219 = vector.load %arg10[%c0_96, %c0_97] : memref<8x128xf32, #tpu.memory_space<vmem>>, vector<8x128xf32>
      tpu.vector_store %arg10[%c0_96, %c0_97], %218 {strides = array<i32>} : memref<8x128xf32, #tpu.memory_space<vmem>>, vector<8x128xf32>,
    } else {
    }
    %c0 = arith.constant 0 : index
    %c0_1 = arith.constant 0 : index
    %3 = vector.load %arg1[%c0, %c0_1] : memref<64x32xbf16, #tpu.memory_space<vmem>>, vector<64x32xbf16>
    %c0_2 = arith.constant 0 : index
    %c0_3 = arith.constant 0 : index
    %4 = vector.load %arg2[%c0_2, %c0_3] : memref<32x128xbf16, #tpu.memory_space<vmem>>, vector<32x128xbf16>
    %cst = arith.constant dense<0.000000e+00> : vector<64x128xf32>
    %5 = tpu.matmul %3, %4, %cst {dimension_numbers = #tpu.dot_dimension_numbers<[1], [0], [0], [1], [0, 0, 1, 1], [], []>} : vector<64x32xbf16>, vector<32x128xbf16>, vector<64x128xf32> -> vector<64x128xf32>
    %c0_4 = arith.constant 0 : index
    %c0_5 = arith.constant 0 : index
    %6 = vector.load %arg4[%c0_4, %c0_5] : memref<1x128xf32, #tpu.memory_space<vmem>>, vector<1x128xf32>
    %7 = vector.broadcast %6 : vector<1x128xf32> to vector<64x128xf32>
    %8 = arith.addf %5, %7 : vector<64x128xf32>
    %c0_6 = arith.constant 0 : index
    %c0_7 = arith.constant 0 : index
    %9 = vector.load %arg8[%c0_6, %c0_7] : memref<64x128xf32, #tpu.memory_space<vmem>>, vector<64x128xf32>
    tpu.vector_store %arg8[%c0_6, %c0_7], %8 {strides = array<i32>} : memref<64x128xf32, #tpu.memory_space<vmem>>, vector<64x128xf32>,
    %c0_8 = arith.constant 0 : index
    %c0_9 = arith.constant 0 : index
    %10 = vector.load %arg3[%c0_8, %c0_9] : memref<128x128xbf16, #tpu.memory_space<vmem>>, vector<128x128xbf16>
    %11 = tpu.iota {dimensions = array<i32: 1>} : vector<8x128xi32>
    %c64_i32 = arith.constant 64 : i32
    %12 = vector.broadcast %c64_i32 : i32 to vector<8x128xi32>
    %13 = arith.cmpi sge, %11, %12 : vector<8x128xi32>
    %c96_i32 = arith.constant 96 : i32
    %14 = vector.broadcast %c96_i32 : i32 to vector<8x128xi32>
    %15 = arith.cmpi slt, %11, %14 : vector<8x128xi32>
    %16 = arith.andi %13, %15 : vector<8x128xi1>
    %c0_10 = arith.constant 0 : index
    %c0_11 = arith.constant 0 : index
    %17 = vector.load %arg9[%c0_10, %c0_11] : memref<8x128xf32, #tpu.memory_space<vmem>>, vector<8x128xf32>
    %c0_12 = arith.constant 0 : index
    %c0_13 = arith.constant 0 : index
    %18 = vector.load %arg10[%c0_12, %c0_13] : memref<8x128xf32, #tpu.memory_space<vmem>>, vector<8x128xf32>
    %c0_i32_14 = arith.constant 0 : i32
    %c8_i32 = arith.constant 8 : i32
    %19 = arith.muli %c0_i32_14, %c8_i32 : i32
    %20 = tpu.assume_multiple %19, 8 : i32
    %21 = arith.index_cast %20 : i32 to index
    %c0_15 = arith.constant 0 : index
    %22 = vector.load %arg8[%21, %c0_15] : memref<64x128xf32, #tpu.memory_space<vmem>>, vector<8x128xf32>
    %23 = arith.truncf %17 : vector<8x128xf32> to vector<8x128xbf16>
    %cst_16 = arith.constant dense<0.000000e+00> : vector<8x128xf32>
    %24 = tpu.matmul %23, %10, %cst_16 {dimension_numbers = #tpu.dot_dimension_numbers<[1], [0], [0], [1], [0, 0, 1, 1], [], []>} : vector<8x128xbf16>, vector<128x128xbf16>, vector<8x128xf32> -> vector<8x128xf32>
    %25 = arith.addf %22, %24 : vector<8x128xf32>
    %26 = math.tanh %25 : vector<8x128xf32>
    %cst_17 = arith.constant 0.000000e+00 : f32
    %27 = vector.broadcast %cst_17 : f32 to vector<8x128xf32>
    %28 = arith.subf %27, %25 : vector<8x128xf32>
    %29 = math.exp %28 : vector<8x128xf32>
    %cst_18 = arith.constant 1.000000e+00 : f32
    %30 = vector.broadcast %cst_18 : f32 to vector<8x128xf32>
    %31 = arith.addf %30, %29 : vector<8x128xf32>
    %cst_19 = arith.constant 1.000000e+00 : f32
    %32 = vector.broadcast %cst_19 : f32 to vector<8x128xf32>
    %33 = arith.divf %32, %31 : vector<8x128xf32>
    %34 = arith.select %16, %26, %33 : vector<8x128xi1>, vector<8x128xf32>
    %c96_i32_20 = arith.constant 96 : i32
    %35 = tpu.dynamic_rotate %34 by %c96_i32_20 dim 1 : vector<8x128xf32>, i32 -> vector<8x128xf32>
    %c64_i32_21 = arith.constant 64 : i32
    %36 = tpu.dynamic_rotate %34 by %c64_i32_21 dim 1 : vector<8x128xf32>, i32 -> vector<8x128xf32>
    %c32_i32 = arith.constant 32 : i32
    %37 = tpu.dynamic_rotate %34 by %c32_i32 dim 1 : vector<8x128xf32>, i32 -> vector<8x128xf32>
    %38 = arith.mulf %35, %18 : vector<8x128xf32>
    %39 = arith.mulf %34, %36 : vector<8x128xf32>
    %40 = arith.addf %38, %39 : vector<8x128xf32>
    %41 = math.tanh %40 : vector<8x128xf32>
    %42 = arith.mulf %37, %41 : vector<8x128xf32>
    %c1_i32 = arith.constant 1 : i32
    %c8_i32_22 = arith.constant 8 : i32
    %43 = arith.muli %c1_i32, %c8_i32_22 : i32
    %44 = tpu.assume_multiple %43, 8 : i32
    %45 = arith.index_cast %44 : i32 to index
    %c0_23 = arith.constant 0 : index
    %46 = vector.load %arg8[%45, %c0_23] : memref<64x128xf32, #tpu.memory_space<vmem>>, vector<8x128xf32>
    %47 = arith.truncf %42 : vector<8x128xf32> to vector<8x128xbf16>
    %cst_24 = arith.constant dense<0.000000e+00> : vector<8x128xf32>
    %48 = tpu.matmul %47, %10, %cst_24 {dimension_numbers = #tpu.dot_dimension_numbers<[1], [0], [0], [1], [0, 0, 1, 1], [], []>} : vector<8x128xbf16>, vector<128x128xbf16>, vector<8x128xf32> -> vector<8x128xf32>
    %49 = arith.addf %46, %48 : vector<8x128xf32>
    %50 = math.tanh %49 : vector<8x128xf32>
    %cst_25 = arith.constant 0.000000e+00 : f32
    %51 = vector.broadcast %cst_25 : f32 to vector<8x128xf32>
    %52 = arith.subf %51, %49 : vector<8x128xf32>
    %53 = math.exp %52 : vector<8x128xf32>
    %cst_26 = arith.constant 1.000000e+00 : f32
    %54 = vector.broadcast %cst_26 : f32 to vector<8x128xf32>
    %55 = arith.addf %54, %53 : vector<8x128xf32>
    %cst_27 = arith.constant 1.000000e+00 : f32
    %56 = vector.broadcast %cst_27 : f32 to vector<8x128xf32>
    %57 = arith.divf %56, %55 : vector<8x128xf32>
    %58 = arith.select %16, %50, %57 : vector<8x128xi1>, vector<8x128xf32>
    %c96_i32_28 = arith.constant 96 : i32
    %59 = tpu.dynamic_rotate %58 by %c96_i32_28 dim 1 : vector<8x128xf32>, i32 -> vector<8x128xf32>
    %c64_i32_29 = arith.constant 64 : i32
    %60 = tpu.dynamic_rotate %58 by %c64_i32_29 dim 1 : vector<8x128xf32>, i32 -> vector<8x128xf32>
    %c32_i32_30 = arith.constant 32 : i32
    %61 = tpu.dynamic_rotate %58 by %c32_i32_30 dim 1 : vector<8x128xf32>, i32 -> vector<8x128xf32>
    %62 = arith.mulf %59, %40 : vector<8x128xf32>
    %63 = arith.mulf %58, %60 : vector<8x128xf32>
    %64 = arith.addf %62, %63 : vector<8x128xf32>
    %65 = math.tanh %64 : vector<8x128xf32>
    %66 = arith.mulf %61, %65 : vector<8x128xf32>
    %c2_i32 = arith.constant 2 : i32
    %c8_i32_31 = arith.constant 8 : i32
    %67 = arith.muli %c2_i32, %c8_i32_31 : i32
    %68 = tpu.assume_multiple %67, 8 : i32
    %69 = arith.index_cast %68 : i32 to index
    %c0_32 = arith.constant 0 : index
    %70 = vector.load %arg8[%69, %c0_32] : memref<64x128xf32, #tpu.memory_space<vmem>>, vector<8x128xf32>
    %71 = arith.truncf %66 : vector<8x128xf32> to vector<8x128xbf16>
    %cst_33 = arith.constant dense<0.000000e+00> : vector<8x128xf32>
    %72 = tpu.matmul %71, %10, %cst_33 {dimension_numbers = #tpu.dot_dimension_numbers<[1], [0], [0], [1], [0, 0, 1, 1], [], []>} : vector<8x128xbf16>, vector<128x128xbf16>, vector<8x128xf32> -> vector<8x128xf32>
    %73 = arith.addf %70, %72 : vector<8x128xf32>
    %74 = math.tanh %73 : vector<8x128xf32>
    %cst_34 = arith.constant 0.000000e+00 : f32
    %75 = vector.broadcast %cst_34 : f32 to vector<8x128xf32>
    %76 = arith.subf %75, %73 : vector<8x128xf32>
    %77 = math.exp %76 : vector<8x128xf32>
    %cst_35 = arith.constant 1.000000e+00 : f32
    %78 = vector.broadcast %cst_35 : f32 to vector<8x128xf32>
    %79 = arith.addf %78, %77 : vector<8x128xf32>
    %cst_36 = arith.constant 1.000000e+00 : f32
    %80 = vector.broadcast %cst_36 : f32 to vector<8x128xf32>
    %81 = arith.divf %80, %79 : vector<8x128xf32>
    %82 = arith.select %16, %74, %81 : vector<8x128xi1>, vector<8x128xf32>
    %c96_i32_37 = arith.constant 96 : i32
    %83 = tpu.dynamic_rotate %82 by %c96_i32_37 dim 1 : vector<8x128xf32>, i32 -> vector<8x128xf32>
    %c64_i32_38 = arith.constant 64 : i32
    %84 = tpu.dynamic_rotate %82 by %c64_i32_38 dim 1 : vector<8x128xf32>, i32 -> vector<8x128xf32>
    %c32_i32_39 = arith.constant 32 : i32
    %85 = tpu.dynamic_rotate %82 by %c32_i32_39 dim 1 : vector<8x128xf32>, i32 -> vector<8x128xf32>
    %86 = arith.mulf %83, %64 : vector<8x128xf32>
    %87 = arith.mulf %82, %84 : vector<8x128xf32>
    %88 = arith.addf %86, %87 : vector<8x128xf32>
    %89 = math.tanh %88 : vector<8x128xf32>
    %90 = arith.mulf %85, %89 : vector<8x128xf32>
    %c3_i32 = arith.constant 3 : i32
    %c8_i32_40 = arith.constant 8 : i32
    %91 = arith.muli %c3_i32, %c8_i32_40 : i32
    %92 = tpu.assume_multiple %91, 8 : i32
    %93 = arith.index_cast %92 : i32 to index
    %c0_41 = arith.constant 0 : index
    %94 = vector.load %arg8[%93, %c0_41] : memref<64x128xf32, #tpu.memory_space<vmem>>, vector<8x128xf32>
    %95 = arith.truncf %90 : vector<8x128xf32> to vector<8x128xbf16>
    %cst_42 = arith.constant dense<0.000000e+00> : vector<8x128xf32>
    %96 = tpu.matmul %95, %10, %cst_42 {dimension_numbers = #tpu.dot_dimension_numbers<[1], [0], [0], [1], [0, 0, 1, 1], [], []>} : vector<8x128xbf16>, vector<128x128xbf16>, vector<8x128xf32> -> vector<8x128xf32>
    %97 = arith.addf %94, %96 : vector<8x128xf32>
    %98 = math.tanh %97 : vector<8x128xf32>
    %cst_43 = arith.constant 0.000000e+00 : f32
    %99 = vector.broadcast %cst_43 : f32 to vector<8x128xf32>
    %100 = arith.subf %99, %97 : vector<8x128xf32>
    %101 = math.exp %100 : vector<8x128xf32>
    %cst_44 = arith.constant 1.000000e+00 : f32
    %102 = vector.broadcast %cst_44 : f32 to vector<8x128xf32>
    %103 = arith.addf %102, %101 : vector<8x128xf32>
    %cst_45 = arith.constant 1.000000e+00 : f32
    %104 = vector.broadcast %cst_45 : f32 to vector<8x128xf32>
    %105 = arith.divf %104, %103 : vector<8x128xf32>
    %106 = arith.select %16, %98, %105 : vector<8x128xi1>, vector<8x128xf32>
    %c96_i32_46 = arith.constant 96 : i32
    %107 = tpu.dynamic_rotate %106 by %c96_i32_46 dim 1 : vector<8x128xf32>, i32 -> vector<8x128xf32>
    %c64_i32_47 = arith.constant 64 : i32
    %108 = tpu.dynamic_rotate %106 by %c64_i32_47 dim 1 : vector<8x128xf32>, i32 -> vector<8x128xf32>
    %c32_i32_48 = arith.constant 32 : i32
    %109 = tpu.dynamic_rotate %106 by %c32_i32_48 dim 1 : vector<8x128xf32>, i32 -> vector<8x128xf32>
    %110 = arith.mulf %107, %88 : vector<8x128xf32>
    %111 = arith.mulf %106, %108 : vector<8x128xf32>
    %112 = arith.addf %110, %111 : vector<8x128xf32>
    %113 = math.tanh %112 : vector<8x128xf32>
    %114 = arith.mulf %109, %113 : vector<8x128xf32>
    %c4_i32 = arith.constant 4 : i32
    %c8_i32_49 = arith.constant 8 : i32
    %115 = arith.muli %c4_i32, %c8_i32_49 : i32
    %116 = tpu.assume_multiple %115, 8 : i32
    %117 = arith.index_cast %116 : i32 to index
    %c0_50 = arith.constant 0 : index
    %118 = vector.load %arg8[%117, %c0_50] : memref<64x128xf32, #tpu.memory_space<vmem>>, vector<8x128xf32>
    %119 = arith.truncf %114 : vector<8x128xf32> to vector<8x128xbf16>
    %cst_51 = arith.constant dense<0.000000e+00> : vector<8x128xf32>
    %120 = tpu.matmul %119, %10, %cst_51 {dimension_numbers = #tpu.dot_dimension_numbers<[1], [0], [0], [1], [0, 0, 1, 1], [], []>} : vector<8x128xbf16>, vector<128x128xbf16>, vector<8x128xf32> -> vector<8x128xf32>
    %121 = arith.addf %118, %120 : vector<8x128xf32>
    %122 = math.tanh %121 : vector<8x128xf32>
    %cst_52 = arith.constant 0.000000e+00 : f32
    %123 = vector.broadcast %cst_52 : f32 to vector<8x128xf32>
    %124 = arith.subf %123, %121 : vector<8x128xf32>
    %125 = math.exp %124 : vector<8x128xf32>
    %cst_53 = arith.constant 1.000000e+00 : f32
    %126 = vector.broadcast %cst_53 : f32 to vector<8x128xf32>
    %127 = arith.addf %126, %125 : vector<8x128xf32>
    %cst_54 = arith.constant 1.000000e+00 : f32
    %128 = vector.broadcast %cst_54 : f32 to vector<8x128xf32>
    %129 = arith.divf %128, %127 : vector<8x128xf32>
    %130 = arith.select %16, %122, %129 : vector<8x128xi1>, vector<8x128xf32>
    %c96_i32_55 = arith.constant 96 : i32
    %131 = tpu.dynamic_rotate %130 by %c96_i32_55 dim 1 : vector<8x128xf32>, i32 -> vector<8x128xf32>
    %c64_i32_56 = arith.constant 64 : i32
    %132 = tpu.dynamic_rotate %130 by %c64_i32_56 dim 1 : vector<8x128xf32>, i32 -> vector<8x128xf32>
    %c32_i32_57 = arith.constant 32 : i32
    %133 = tpu.dynamic_rotate %130 by %c32_i32_57 dim 1 : vector<8x128xf32>, i32 -> vector<8x128xf32>
    %134 = arith.mulf %131, %112 : vector<8x128xf32>
    %135 = arith.mulf %130, %132 : vector<8x128xf32>
    %136 = arith.addf %134, %135 : vector<8x128xf32>
    %137 = math.tanh %136 : vector<8x128xf32>
    %138 = arith.mulf %133, %137 : vector<8x128xf32>
    %c5_i32 = arith.constant 5 : i32
    %c8_i32_58 = arith.constant 8 : i32
    %139 = arith.muli %c5_i32, %c8_i32_58 : i32
    %140 = tpu.assume_multiple %139, 8 : i32
    %141 = arith.index_cast %140 : i32 to index
    %c0_59 = arith.constant 0 : index
    %142 = vector.load %arg8[%141, %c0_59] : memref<64x128xf32, #tpu.memory_space<vmem>>, vector<8x128xf32>
    %143 = arith.truncf %138 : vector<8x128xf32> to vector<8x128xbf16>
    %cst_60 = arith.constant dense<0.000000e+00> : vector<8x128xf32>
    %144 = tpu.matmul %143, %10, %cst_60 {dimension_numbers = #tpu.dot_dimension_numbers<[1], [0], [0], [1], [0, 0, 1, 1], [], []>} : vector<8x128xbf16>, vector<128x128xbf16>, vector<8x128xf32> -> vector<8x128xf32>
    %145 = arith.addf %142, %144 : vector<8x128xf32>
    %146 = math.tanh %145 : vector<8x128xf32>
    %cst_61 = arith.constant 0.000000e+00 : f32
    %147 = vector.broadcast %cst_61 : f32 to vector<8x128xf32>
    %148 = arith.subf %147, %145 : vector<8x128xf32>
    %149 = math.exp %148 : vector<8x128xf32>
    %cst_62 = arith.constant 1.000000e+00 : f32
    %150 = vector.broadcast %cst_62 : f32 to vector<8x128xf32>
    %151 = arith.addf %150, %149 : vector<8x128xf32>
    %cst_63 = arith.constant 1.000000e+00 : f32
    %152 = vector.broadcast %cst_63 : f32 to vector<8x128xf32>
    %153 = arith.divf %152, %151 : vector<8x128xf32>
    %154 = arith.select %16, %146, %153 : vector<8x128xi1>, vector<8x128xf32>
    %c96_i32_64 = arith.constant 96 : i32
    %155 = tpu.dynamic_rotate %154 by %c96_i32_64 dim 1 : vector<8x128xf32>, i32 -> vector<8x128xf32>
    %c64_i32_65 = arith.constant 64 : i32
    %156 = tpu.dynamic_rotate %154 by %c64_i32_65 dim 1 : vector<8x128xf32>, i32 -> vector<8x128xf32>
    %c32_i32_66 = arith.constant 32 : i32
    %157 = tpu.dynamic_rotate %154 by %c32_i32_66 dim 1 : vector<8x128xf32>, i32 -> vector<8x128xf32>
    %158 = arith.mulf %155, %136 : vector<8x128xf32>
    %159 = arith.mulf %154, %156 : vector<8x128xf32>
    %160 = arith.addf %158, %159 : vector<8x128xf32>
    %161 = math.tanh %160 : vector<8x128xf32>
    %162 = arith.mulf %157, %161 : vector<8x128xf32>
    %c6_i32 = arith.constant 6 : i32
    %c8_i32_67 = arith.constant 8 : i32
    %163 = arith.muli %c6_i32, %c8_i32_67 : i32
    %164 = tpu.assume_multiple %163, 8 : i32
    %165 = arith.index_cast %164 : i32 to index
    %c0_68 = arith.constant 0 : index
    %166 = vector.load %arg8[%165, %c0_68] : memref<64x128xf32, #tpu.memory_space<vmem>>, vector<8x128xf32>
    %167 = arith.truncf %162 : vector<8x128xf32> to vector<8x128xbf16>
    %cst_69 = arith.constant dense<0.000000e+00> : vector<8x128xf32>
    %168 = tpu.matmul %167, %10, %cst_69 {dimension_numbers = #tpu.dot_dimension_numbers<[1], [0], [0], [1], [0, 0, 1, 1], [], []>} : vector<8x128xbf16>, vector<128x128xbf16>, vector<8x128xf32> -> vector<8x128xf32>
    %169 = arith.addf %166, %168 : vector<8x128xf32>
    %170 = math.tanh %169 : vector<8x128xf32>
    %cst_70 = arith.constant 0.000000e+00 : f32
    %171 = vector.broadcast %cst_70 : f32 to vector<8x128xf32>
    %172 = arith.subf %171, %169 : vector<8x128xf32>
    %173 = math.exp %172 : vector<8x128xf32>
    %cst_71 = arith.constant 1.000000e+00 : f32
    %174 = vector.broadcast %cst_71 : f32 to vector<8x128xf32>
    %175 = arith.addf %174, %173 : vector<8x128xf32>
    %cst_72 = arith.constant 1.000000e+00 : f32
    %176 = vector.broadcast %cst_72 : f32 to vector<8x128xf32>
    %177 = arith.divf %176, %175 : vector<8x128xf32>
    %178 = arith.select %16, %170, %177 : vector<8x128xi1>, vector<8x128xf32>
    %c96_i32_73 = arith.constant 96 : i32
    %179 = tpu.dynamic_rotate %178 by %c96_i32_73 dim 1 : vector<8x128xf32>, i32 -> vector<8x128xf32>
    %c64_i32_74 = arith.constant 64 : i32
    %180 = tpu.dynamic_rotate %178 by %c64_i32_74 dim 1 : vector<8x128xf32>, i32 -> vector<8x128xf32>
    %c32_i32_75 = arith.constant 32 : i32
    %181 = tpu.dynamic_rotate %178 by %c32_i32_75 dim 1 : vector<8x128xf32>, i32 -> vector<8x128xf32>
    %182 = arith.mulf %179, %160 : vector<8x128xf32>
    %183 = arith.mulf %178, %180 : vector<8x128xf32>
    %184 = arith.addf %182, %183 : vector<8x128xf32>
    %185 = math.tanh %184 : vector<8x128xf32>
    %186 = arith.mulf %181, %185 : vector<8x128xf32>
    %c7_i32 = arith.constant 7 : i32
    %c8_i32_76 = arith.constant 8 : i32
    %187 = arith.muli %c7_i32, %c8_i32_76 : i32
    %188 = tpu.assume_multiple %187, 8 : i32
    %189 = arith.index_cast %188 : i32 to index
    %c0_77 = arith.constant 0 : index
    %190 = vector.load %arg8[%189, %c0_77] : memref<64x128xf32, #tpu.memory_space<vmem>>, vector<8x128xf32>
    %191 = arith.truncf %186 : vector<8x128xf32> to vector<8x128xbf16>
    %cst_78 = arith.constant dense<0.000000e+00> : vector<8x128xf32>
    %192 = tpu.matmul %191, %10, %cst_78 {dimension_numbers = #tpu.dot_dimension_numbers<[1], [0], [0], [1], [0, 0, 1, 1], [], []>} : vector<8x128xbf16>, vector<128x128xbf16>, vector<8x128xf32> -> vector<8x128xf32>
    %193 = arith.addf %190, %192 : vector<8x128xf32>
    %194 = math.tanh %193 : vector<8x128xf32>
    %cst_79 = arith.constant 0.000000e+00 : f32
    %195 = vector.broadcast %cst_79 : f32 to vector<8x128xf32>
    %196 = arith.subf %195, %193 : vector<8x128xf32>
    %197 = math.exp %196 : vector<8x128xf32>
    %cst_80 = arith.constant 1.000000e+00 : f32
    %198 = vector.broadcast %cst_80 : f32 to vector<8x128xf32>
    %199 = arith.addf %198, %197 : vector<8x128xf32>
    %cst_81 = arith.constant 1.000000e+00 : f32
    %200 = vector.broadcast %cst_81 : f32 to vector<8x128xf32>
    %201 = arith.divf %200, %199 : vector<8x128xf32>
    %202 = arith.select %16, %194, %201 : vector<8x128xi1>, vector<8x128xf32>
    %c96_i32_82 = arith.constant 96 : i32
    %203 = tpu.dynamic_rotate %202 by %c96_i32_82 dim 1 : vector<8x128xf32>, i32 -> vector<8x128xf32>
    %c64_i32_83 = arith.constant 64 : i32
    %204 = tpu.dynamic_rotate %202 by %c64_i32_83 dim 1 : vector<8x128xf32>, i32 -> vector<8x128xf32>
    %c32_i32_84 = arith.constant 32 : i32
    %205 = tpu.dynamic_rotate %202 by %c32_i32_84 dim 1 : vector<8x128xf32>, i32 -> vector<8x128xf32>
    %206 = arith.mulf %203, %184 : vector<8x128xf32>
    %207 = arith.mulf %202, %204 : vector<8x128xf32>
    %208 = arith.addf %206, %207 : vector<8x128xf32>
    %209 = math.tanh %208 : vector<8x128xf32>
    %210 = arith.mulf %205, %209 : vector<8x128xf32>
    %c8_i32_85 = arith.constant 8 : i32
    %c0_86 = arith.constant 0 : index
    %c0_87 = arith.constant 0 : index
    %211 = vector.load %arg9[%c0_86, %c0_87] : memref<8x128xf32, #tpu.memory_space<vmem>>, vector<8x128xf32>
    tpu.vector_store %arg9[%c0_86, %c0_87], %210 {strides = array<i32>} : memref<8x128xf32, #tpu.memory_space<vmem>>, vector<8x128xf32>,
    %c0_88 = arith.constant 0 : index
    %c0_89 = arith.constant 0 : index
    %212 = vector.load %arg10[%c0_88, %c0_89] : memref<8x128xf32, #tpu.memory_space<vmem>>, vector<8x128xf32>
    tpu.vector_store %arg10[%c0_88, %c0_89], %208 {strides = array<i32>} : memref<8x128xf32, #tpu.memory_space<vmem>>, vector<8x128xf32>,
    %c0_i32_90 = arith.constant 0 : i32
    %213 = arith.cmpi eq, %arg0, %c0_i32_90 : i32
    %214 = arith.extui %213 : i1 to i32
    %c0_i32_91 = arith.constant 0 : i32
    %215 = arith.cmpi ne, %214, %c0_i32_91 : i32
    scf.if %215 {
      %216 = arith.truncf %210 : vector<8x128xf32> to vector<8x128xbf16>
      %c0_92 = arith.constant 0 : index
      %c0_93 = arith.constant 0 : index
      %217 = vector.load %arg5[%c0_92, %c0_93] : memref<128x128xbf16, #tpu.memory_space<vmem>>, vector<128x128xbf16>
      %cst_94 = arith.constant dense<0.000000e+00> : vector<8x128xf32>
      %218 = tpu.matmul %216, %217, %cst_94 {dimension_numbers = #tpu.dot_dimension_numbers<[1], [0], [0], [1], [0, 0, 1, 1], [], []>} : vector<8x128xbf16>, vector<128x128xbf16>, vector<8x128xf32> -> vector<8x128xf32>
      %c0_95 = arith.constant 0 : index
      %c0_96 = arith.constant 0 : index
      %219 = vector.load %arg6[%c0_95, %c0_96] : memref<1x128xf32, #tpu.memory_space<vmem>>, vector<1x128xf32>
      %220 = vector.broadcast %219 : vector<1x128xf32> to vector<8x128xf32>
      %221 = arith.addf %218, %220 : vector<8x128xf32>
      %c0_97 = arith.constant 0 : index
      %c0_98 = arith.constant 0 : index
      %222 = vector.load %arg7[%c0_97, %c0_98] : memref<8x128xf32, #tpu.memory_space<vmem>>, vector<8x128xf32>
      tpu.vector_store %arg7[%c0_97, %c0_98], %221 {strides = array<i32>} : memref<8x128xf32, #tpu.memory_space<vmem>>, vector<8x128xf32>,
    } else {
    }
    return
  }
  func.func @transform_0(%arg0: i32) -> (i32, i32) {
    %c0_i32 = arith.constant 0 : i32
    %c0_i32_0 = arith.constant 0 : i32
    return %arg0, %c0_i32 : i32, i32
  }
  func.func @transform_1(%arg0: i32) -> (i32, i32) {
    %c0_i32 = arith.constant 0 : i32
    %c0_i32_0 = arith.constant 0 : i32
    %c0_i32_1 = arith.constant 0 : i32
    return %c0_i32, %c0_i32_0 : i32, i32
  }
  func.func @transform_2(%arg0: i32) -> (i32, i32) {
    %c0_i32 = arith.constant 0 : i32
    %c0_i32_0 = arith.constant 0 : i32
    %c0_i32_1 = arith.constant 0 : i32
    return %c0_i32, %c0_i32_0 : i32, i32
  }
  func.func @transform_3(%arg0: i32) -> (i32, i32) {
    %c0_i32 = arith.constant 0 : i32
    %c0_i32_0 = arith.constant 0 : i32
    %c0_i32_1 = arith.constant 0 : i32
    return %c0_i32, %c0_i32_0 : i32, i32
  }
  func.func @transform_4(%arg0: i32) -> (i32, i32) {
    %c0_i32 = arith.constant 0 : i32
    %c0_i32_0 = arith.constant 0 : i32
    %c0_i32_1 = arith.constant 0 : i32
    return %c0_i32, %c0_i32_0 : i32, i32
  }
  func.func @transform_5(%arg0: i32) -> (i32, i32) {
    %c0_i32 = arith.constant 0 : i32
    %c0_i32_0 = arith.constant 0 : i32
    %c0_i32_1 = arith.constant 0 : i32
    return %c0_i32, %c0_i32_0 : i32, i32
  }
  func.func @transform_6(%arg0: i32) -> (i32, i32) {
    %c0_i32 = arith.constant 0 : i32
    %c0_i32_0 = arith.constant 0 : i32
    %c0_i32_1 = arith.constant 0 : i32
    return %c0_i32, %c0_i32_0 : i32, i32
  }
}

</mosaic_0001>

<bundles_post_ra>
// kernel: comments_classifier_forward.1
= control target key start
LH: loop header
LB: loop body
LE: loop exit
PB: predicated region body
PF: predicated region fallthrough
CT: control target
= control target key end

     0   :  { %v1262_v0 = vmov 0.0   ;;  %vm1263_vm0 = vmmov 0   ;;  %vm81_vm1 = vcmask 261120   ;;  %v1264_v13 = vmov 0.0|0.0   ;;  %s1265_s24 = smov 32   ;;  %s1267_s25 = smov 64   ;;  %s1627_s2 = inlined_call_operand.vmem [shape: bf16[128,128], index: 2, kind: input, shape index: {}]   ;;  %s1628_s1 = inlined_call_operand.vmem [shape: bf16[32,128], index: 1, kind: input, shape index: {}]   ;;  %s1629_s0 = inlined_call_operand.vmem [shape: bf16[64,32], index: 0, kind: input, shape index: {}]   ;;  %s1630_s3 = inlined_call_operand.vmem [shape: f32[1,128], index: 3, kind: input, shape index: {}]   ;;  %s1631_s4 = inlined_call_operand.vmem [shape: bf16[128,128], index: 4, kind: input, shape index: {}]   ;;  %s1632_s5 = inlined_call_operand.vmem [shape: f32[1,128], index: 5, kind: input, shape index: {}]   ;;  %s1633_s6 = inlined_call_operand.vmem [shape: f32[8,128], index: 6, kind: output, shape index: {}]  }
   0x1   :  { %990 = vmatprep.subr.bf16.mxu1 %v1262_v0  ;;  %v1307_v1 = vld [vmem:[%s1627_s2] sm:$0xff]   ;;  %1006 = vmatprep.mubr.msk.bf16.mxu1 %vm1263_vm0, %v1262_v0  ;;  %v1315_v2 = vld [vmem:[%s1627_s2 + $0x8] sm:$0xff]   ;;  %v1325_v4 = vld [vmem:[%s1627_s2 + $0x10] sm:$0xff]   ;;  %v183_v28 = vlaneseq }
   0x2   :  { %991 = vmatpush3.bf16.msra.mxu1 %v1307_v1  ;;  %v1181_v3 = vld [vmem:[%s1628_s1] sm:$0xff]   ;;  %v1183_v5 = vld [vmem:[%s1628_s1 + $0x8] sm:$0xff]   ;;  %v1338_v7 = vld [vmem:[%s1627_s2 + $0x18] sm:$0xff]  }
   0x3   :  { %992 = vmatprep.subr.bf16.mxu1 %v1262_v0  ;;  %978 = vmatprep.subr.bf16.mxu0 %v1181_v3  ;;  %v1184_v6 = vld [vmem:[%s1629_s0] sm:$0xff]   ;;  %v1186_v8 = vld [vmem:[%s1629_s0 + $0x8] sm:$0xff]   ;;  %v1369_v11 = vld [vmem:[%s1627_s2 + $0x30] sm:$0xff]   ;;  %v184_v30 = vand.u32 127, %v183_v28 }
   0x4   :  { %979 = vmatpush3.bf16.msra.mxu0 %v1181_v3  ;;  %982 = vmatprep.mubr.msk.bf16.mxu0 %vm81_vm1, %v1184_v6  ;;  %v1350_v9 = vld [vmem:[%s1627_s2 + $0x20] sm:$0xff]   ;;  %v1360_v10 = vld [vmem:[%s1627_s2 + $0x28] sm:$0xff]   ;;  %v1378_v12 = vld [vmem:[%s1627_s2 + $0x38] sm:$0xff]  }
   0x5   :  { %980 = vmatprep.subr.bf16.mxu0 %v1183_v5  ;;  %v1420_v18 = vld [vmem:[%s1630_s3] ss:$0 sm:$0xff]  ;;  %vm185_vm2 = vcmp.ge.s32.totalorder %v184_v30, 64  ;;  %vm186_vm3 = vcmp.lt.s32.totalorder %v184_v30, 96  ;;  %v1188_v31 = vld [vmem:[%s1629_s0 + $0x10] sm:$0xff]   ;;  %v1189_v32 = vld [vmem:[%s1629_s0 + $0x18] sm:$0xff]  }
   0x6   :  { %993 = vmatpush3.bf16.msra.mxu1 %v1315_v2  ;;  %vm1429_vm4 = vmand %vm185_vm2, %vm186_vm3  ;;  %s1266_s0 = smov 96  }
   0x7   :  { %994 = vmatprep.subr.bf16.mxu1 %v1262_v0 }
   0x8   :  { %981 = vmatpush3.bf16.msra.mxu0 %v1183_v5 }
   0x9   :  { %1010 = vmatprep.subr.bf16.mxu0 %v1262_v0 }
   0xa   :  { %995 = vmatpush3.bf16.msra.mxu1 %v1325_v4 }
   0xb   :  { %996 = vmatprep.subr.bf16.mxu1 %v1262_v0  ;;  %983 = vmatmul.mubr.msk.bf16.vlgmr.msra.gmra.mrb[0].mxu0 %vm81_vm1, %v1186_v8 }
   0xc   :  { %1011 = vmatpush3.bf16.msra.mxu0 %v1307_v1  ;;  %986 = vmatprep.mubr.msk.bf16.mxu0 %vm81_vm1, %v1188_v31 }
   0xd   :  { %1012 = vmatprep.subr.bf16.mxu0 %v1262_v0 }
   0xe   :  { %997 = vmatpush3.bf16.msra.mxu1 %v1338_v7 }
   0xf   :  { %998 = vmatprep.subr.bf16.mxu1 %v1262_v0 }
  0x10   :  { %1013 = vmatpush3.bf16.msra.mxu0 %v1315_v2 }
  0x11   :  { %1014 = vmatprep.subr.bf16.mxu0 %v1262_v0 }
  0x12   :  { %999 = vmatpush3.bf16.msra.mxu1 %v1350_v9 }
  0x13   :  { %1000 = vmatprep.subr.bf16.mxu1 %v1262_v0  ;;  %987 = vmatmul.mubr.msk.bf16.gmra.mrb[4].mxu0 %vm81_vm1, %v1189_v32 }
  0x14   :  { %1015 = vmatpush3.bf16.msra.mxu0 %v1325_v4  ;;  %1026 = vmatprep.mubr.msk.bf16.mxu0 %vm1263_vm0, %v1262_v0 }
  0x15   :  { %1016 = vmatprep.subr.bf16.mxu0 %v1262_v0 }
  0x16   :  { %1001 = vmatpush3.bf16.msra.mxu1 %v1360_v10 }
  0x17   :  { %1002 = vmatprep.subr.bf16.mxu1 %v1262_v0 }
  0x18   :  { %1017 = vmatpush3.bf16.msra.mxu0 %v1338_v7 }
  0x19   :  { %1018 = vmatprep.subr.bf16.mxu0 %v1262_v0 }
  0x1a   :  { %1003 = vmatpush3.bf16.msra.mxu1 %v1369_v11 }
  0x1b   :  { %1004 = vmatprep.subr.bf16.mxu1 %v1262_v0 }
  0x1c   :  { %1019 = vmatpush3.bf16.msra.mxu0 %v1350_v9 }
  0x1d   :  { %1020 = vmatprep.subr.bf16.mxu0 %v1262_v0 }
  0x1e   :  { %1005 = vmatpush3.bf16.msra.mxu1 %v1378_v12 }
  0x1f   :  { %1030 = vmatprep.subr.bf16.mxu1 %v1262_v0 }
  0x20   :  { %1021 = vmatpush3.bf16.msra.mxu0 %v1360_v10 }
  0x21   :  { %1007 = vmatmul.mubr.bf16.vlgmr.msra.gmra.mrb[0].mxu1 %v1264_v13  ;;  %1022 = vmatprep.subr.bf16.mxu0 %v1262_v0 }
  0x22   :  { %1031 = vmatpush3.bf16.msra.mxu1 %v1307_v1  ;;  %1046 = vmatprep.mubr.msk.bf16.mxu1 %vm1263_vm0, %v1262_v0 }
  0x23   :  { %1032 = vmatprep.subr.bf16.mxu1 %v1262_v0 }
  0x24   :  { %1023 = vmatpush3.bf16.msra.mxu0 %v1369_v11 }
  0x25   :  { %1024 = vmatprep.subr.bf16.mxu0 %v1262_v0 }
  0x26   :  { %1033 = vmatpush3.bf16.msra.mxu1 %v1315_v2 }
  0x27   :  { %1034 = vmatprep.subr.bf16.mxu1 %v1262_v0 }
  0x28   :  { %1025 = vmatpush3.bf16.msra.mxu0 %v1378_v12 }
  0x29   :  { %1050 = vmatprep.subr.bf16.mxu0 %v1262_v0 }
  0x2a   :  { %1035 = vmatpush3.bf16.msra.mxu1 %v1325_v4 }
  0x2b   :  { %1036 = vmatprep.subr.bf16.mxu1 %v1262_v0 }
  0x2e   :  { %1037 = vmatpush3.bf16.msra.mxu1 %v1338_v7 }
  0x2f   :  { %1038 = vmatprep.subr.bf16.mxu1 %v1262_v0 }
  0x32   :  { %1039 = vmatpush3.bf16.msra.mxu1 %v1350_v9 }
  0x33   :  { %1040 = vmatprep.subr.bf16.mxu1 %v1262_v0 }
  0x36   :  { %1041 = vmatpush3.bf16.msra.mxu1 %v1360_v10 }
  0x37   :  { %1042 = vmatprep.subr.bf16.mxu1 %v1262_v0 }
  0x3a   :  { %1043 = vmatpush3.bf16.msra.mxu1 %v1369_v11 }
  0x3b   :  { %1044 = vmatprep.subr.bf16.mxu1 %v1262_v0 }
  0x3e   :  { %1045 = vmatpush3.bf16.msra.mxu1 %v1378_v12 }
  0x3f   :  { %1070 = vmatprep.subr.bf16.mxu1 %v1262_v0 }
  0xde   :  { %v1411_v14 = vpop.f32.mrb[0].mxu0 }
  0xdf   :  { %v128_v15 = vpop.f32.mrb[1].mxu0 }
  0xe0   :  { %v1413_v16 = vpop.f32.mrb[2].mxu0  ;;  %v129_v19 = vadd.f32 %v1420_v18, %v128_v15 }
  0xe1   :  { %v1415_v17 = vpop.f32.mrb[3].mxu0 }
  0xe2   :  { %v132_v50 = vadd.f32 %v1420_v18, %v1415_v17 }
  0xe6   :  { %v1460_v46 = vpop.f32.mrb[4].mxu0 }
  0xe7   :  { %v1462_v47 = vpop.f32.mrb[5].mxu0 }
  0xe8   :  { %v1464_v48 = vpop.f32.mrb[6].mxu0 }
  0xe9   :  { %v1466_v49 = vpop.f32.mrb[7].mxu0 }
  0xf4   :  { %v274_v20 = vpop.f32.mrb[0].mxu1 }
  0xf5   :  { %v280_v21 = vadd.f32 %v274_v20, %v129_v19  ;;  %v1008_v22 = vpop.f32.mrb[1].mxu1  ;;  %v137_v20 = vadd.f32 %v1411_v14, %v1420_v18 }
  0xf6   :  { %v277_v23 = vpop.f32.mrb[2].mxu1 }
  0xf7   :  { %v282_v24 = vsub.f32 0.0, %v280_v21  ;;  %v1009_v25 = vpop.f32.mrb[3].mxu1 }
  0xf9   :  { %v283_v26 = vmul.f32 1.442695, %v282_v24 }
  0xfb   :  { %1198 = vpow2.f32 %v283_v26 }
  0xfc   :  { %1200 = vtanh.f32 %v280_v21 }
 0x105   :  { %v1199_v27 = vpop.eup %1198 }
 0x106   :  { %v285_v29 = vadd.f32 1.0, %v1199_v27  ;;  %v1201_v34 = vpop.eup %1200 }
 0x108   :  { %1202 = vrcp.f32 %v285_v29 }
 0x112   :  { %v1203_v35 = vpop.eup %1202 }
 0x113   :  { %v288_v36 = vsel %vm1429_vm4, %v1201_v34, %v1203_v35 }
 0x114   :  { %293 = vrot.lane.b32.xlu1 %v288_v36, %s1265_s24  ;;  %289 = vrot.lane.b32.xlu0 %v288_v36, %s1266_s0 }
 0x118   :  { %291 = vrot.lane.b32.xlu0 %v288_v36, %s1267_s25 }
 0x186   :  { %v290_v37 = vpop.permute.xlu0 %289  ;;  %v294_v43 = vpop.permute.xlu1 %293 }
 0x187   :  { %v295_v39 = vmul.f32 0.0, %v290_v37 }
 0x18a   :  { %v292_v38 = vpop.permute.xlu0 %291 }
 0x18b   :  { %v296_v40 = vmul.f32 %v292_v38, %v288_v36 }
 0x18d   :  { %v297_v41 = vadd.f32 %v296_v40, %v295_v39 }
 0x18f   :  { %1204 = vtanh.f32 %v297_v41 }
 0x199   :  { %v1205_v42 = vpop.eup %1204 }
 0x19a   :  { %v299_v44 = vmul.f32 %v1205_v42, %v294_v43  ;;  %v140_v42 = vadd.f32 %v1413_v16, %v1420_v18 }
 0x19c   :  { %v302_v45 = vpack.c.bf16 %v299_v44, %v299_v44 }
 0x19e   :  { %1027 = vmatmul.mubr.bf16.vlgmr.msra.gmra.mrb[8].mxu0 %v302_v45 }
 0x19f   :  { %1051 = vmatpush3.bf16.msra.mxu0 %v1307_v1  ;;  %1066 = vmatprep.mubr.msk.bf16.mxu0 %vm1263_vm0, %v1262_v0 }
 0x1a0   :  { %1052 = vmatprep.subr.bf16.mxu0 %v1262_v0 }
 0x1a3   :  { %1053 = vmatpush3.bf16.msra.mxu0 %v1315_v2 }
 0x1a4   :  { %1054 = vmatprep.subr.bf16.mxu0 %v1262_v0 }
 0x1a7   :  { %1055 = vmatpush3.bf16.msra.mxu0 %v1325_v4 }
 0x1a8   :  { %1056 = vmatprep.subr.bf16.mxu0 %v1262_v0 }
 0x1ab   :  { %1057 = vmatpush3.bf16.msra.mxu0 %v1338_v7 }
 0x1ac   :  { %1058 = vmatprep.subr.bf16.mxu0 %v1262_v0 }
 0x1af   :  { %1059 = vmatpush3.bf16.msra.mxu0 %v1350_v9 }
 0x1b0   :  { %1060 = vmatprep.subr.bf16.mxu0 %v1262_v0 }
 0x1b3   :  { %1061 = vmatpush3.bf16.msra.mxu0 %v1360_v10 }
 0x1b4   :  { %1062 = vmatprep.subr.bf16.mxu0 %v1262_v0 }
 0x1b7   :  { %1063 = vmatpush3.bf16.msra.mxu0 %v1369_v11 }
 0x1b8   :  { %1064 = vmatprep.subr.bf16.mxu0 %v1262_v0 }
 0x1bb   :  { %1065 = vmatpush3.bf16.msra.mxu0 %v1378_v12 }
 0x1bc   :  { %1090 = vmatprep.subr.bf16.mxu0 %v1262_v0 }
 0x271   :  { %v337_v51 = vpop.f32.mrb[8].mxu0 }
 0x272   :  { %v343_v52 = vadd.f32 %v337_v51, %v132_v50  ;;  %v1028_v53 = vpop.f32.mrb[9].mxu0 }
 0x273   :  { %v340_v54 = vpop.f32.mrb[10].mxu0 }
 0x274   :  { %v345_v55 = vsub.f32 0.0, %v343_v52  ;;  %v1029_v56 = vpop.f32.mrb[11].mxu0 }
 0x276   :  { %v346_v57 = vmul.f32 1.442695, %v345_v55 }
 0x278   :  { %1206 = vpow2.f32 %v346_v57 }
 0x279   :  { %1208 = vtanh.f32 %v343_v52 }
 0x282   :  { %v1207_v58 = vpop.eup %1206 }
 0x283   :  { %v348_v59 = vadd.f32 1.0, %v1207_v58  ;;  %v1209_v60 = vpop.eup %1208 }
 0x285   :  { %1210 = vrcp.f32 %v348_v59 }
 0x28f   :  { %v1211_v61 = vpop.eup %1210 }
 0x290   :  { %v351_v62 = vsel %vm1429_vm4, %v1209_v60, %v1211_v61 }
 0x291   :  { %354 = vrot.lane.b32.xlu0 %v351_v62, %s1267_s25  ;;  %352 = vrot.lane.b32.xlu1 %v351_v62, %s1266_s0 }
 0x295   :  { %356 = vrot.lane.b32.xlu1 %v351_v62, %s1265_s24 }
 0x303   :  { %v355_v63 = vpop.permute.xlu0 %354  ;;  %v353_v3 = vpop.permute.xlu1 %352 }
 0x304   :  { %v359_v5 = vmul.f32 %v355_v63, %v351_v62  ;;  %v358_v6 = vmul.f32 %v353_v3, %v297_v41 }
 0x306   :  { %v360_v8 = vadd.f32 %v359_v5, %v358_v6 }
 0x307   :  { %v357_v15 = vpop.permute.xlu1 %356 }
 0x308   :  { %1212 = vtanh.f32 %v360_v8 }
 0x312   :  { %v1213_v13 = vpop.eup %1212 }
 0x313   :  { %v362_v17 = vmul.f32 %v1213_v13, %v357_v15 }
 0x315   :  { %v365_v19 = vpack.c.bf16 %v362_v17, %v362_v17 }
 0x317   :  { %1047 = vmatmul.mubr.bf16.vlgmr.msra.gmra.mrb[4].mxu1 %v365_v19 }
 0x318   :  { %1071 = vmatpush3.bf16.msra.mxu1 %v1307_v1  ;;  %1086 = vmatprep.mubr.msk.bf16.mxu1 %vm1263_vm0, %v1262_v0 }
 0x319   :  { %1072 = vmatprep.subr.bf16.mxu1 %v1262_v0 }
 0x31c   :  { %1073 = vmatpush3.bf16.msra.mxu1 %v1315_v2 }
 0x31d   :  { %1074 = vmatprep.subr.bf16.mxu1 %v1262_v0 }
 0x320   :  { %1075 = vmatpush3.bf16.msra.mxu1 %v1325_v4 }
 0x321   :  { %1076 = vmatprep.subr.bf16.mxu1 %v1262_v0 }
 0x324   :  { %1077 = vmatpush3.bf16.msra.mxu1 %v1338_v7 }
 0x325   :  { %1078 = vmatprep.subr.bf16.mxu1 %v1262_v0 }
 0x328   :  { %1079 = vmatpush3.bf16.msra.mxu1 %v1350_v9 }
 0x329   :  { %1080 = vmatprep.subr.bf16.mxu1 %v1262_v0 }
 0x32c   :  { %1081 = vmatpush3.bf16.msra.mxu1 %v1360_v10 }
 0x32d   :  { %1082 = vmatprep.subr.bf16.mxu1 %v1262_v0 }
 0x330   :  { %1083 = vmatpush3.bf16.msra.mxu1 %v1369_v11 }
 0x331   :  { %1084 = vmatprep.subr.bf16.mxu1 %v1262_v0 }
 0x334   :  { %1085 = vmatpush3.bf16.msra.mxu1 %v1378_v12 }
 0x335   :  { %1110 = vmatprep.subr.bf16.mxu1 %v1262_v0 }
 0x3ea   :  { %v400_v21 = vpop.f32.mrb[4].mxu1 }
 0x3eb   :  { %v406_v22 = vadd.f32 %v400_v21, %v137_v20  ;;  %v1048_v23 = vpop.f32.mrb[5].mxu1 }
 0x3ec   :  { %v403_v24 = vpop.f32.mrb[6].mxu1 }
 0x3ed   :  { %v408_v25 = vsub.f32 0.0, %v406_v22  ;;  %v1049_v26 = vpop.f32.mrb[7].mxu1 }
 0x3ef   :  { %v409_v27 = vmul.f32 1.442695, %v408_v25 }
 0x3f1   :  { %1214 = vpow2.f32 %v409_v27 }
 0x3f2   :  { %1216 = vtanh.f32 %v406_v22 }
 0x3fb   :  { %v1215_v28 = vpop.eup %1214 }
 0x3fc   :  { %v411_v29 = vadd.f32 1.0, %v1215_v28  ;;  %v1217_v30 = vpop.eup %1216 }
 0x3fe   :  { %1218 = vrcp.f32 %v411_v29 }
 0x408   :  { %v1219_v31 = vpop.eup %1218 }
 0x409   :  { %v414_v32 = vsel %vm1429_vm4, %v1217_v30, %v1219_v31 }
 0x40a   :  { %417 = vrot.lane.b32.xlu1 %v414_v32, %s1267_s25  ;;  %415 = vrot.lane.b32.xlu0 %v414_v32, %s1266_s0 }
 0x40e   :  { %419 = vrot.lane.b32.xlu0 %v414_v32, %s1265_s24 }
 0x47c   :  { %v418_v14 = vpop.permute.xlu1 %417  ;;  %v416_v34 = vpop.permute.xlu0 %415 }
 0x47d   :  { %v422_v35 = vmul.f32 %v418_v14, %v414_v32  ;;  %v421_v36 = vmul.f32 %v416_v34, %v360_v8  ;;  %v145_v8 = vadd.f32 %v1420_v18, %v1462_v47 }
 0x47f   :  { %v423_v37 = vadd.f32 %v422_v35, %v421_v36 }
 0x480   :  { %v420_v39 = vpop.permute.xlu0 %419 }
 0x481   :  { %1220 = vtanh.f32 %v423_v37 }
 0x48b   :  { %v1221_v38 = vpop.eup %1220 }
 0x48c   :  { %v425_v40 = vmul.f32 %v1221_v38, %v420_v39 }
 0x48e   :  { %v428_v41 = vpack.c.bf16 %v425_v40, %v425_v40 }
 0x490   :  { %1067 = vmatmul.mubr.bf16.vlgmr.msra.gmra.mrb[12].mxu0 %v428_v41 }
 0x491   :  { %1091 = vmatpush3.bf16.msra.mxu0 %v1307_v1  ;;  %1106 = vmatprep.mubr.msk.bf16.mxu0 %vm1263_vm0, %v1262_v0 }
 0x492   :  { %1092 = vmatprep.subr.bf16.mxu0 %v1262_v0 }
 0x495   :  { %1093 = vmatpush3.bf16.msra.mxu0 %v1315_v2 }
 0x496   :  { %1094 = vmatprep.subr.bf16.mxu0 %v1262_v0 }
 0x499   :  { %1095 = vmatpush3.bf16.msra.mxu0 %v1325_v4 }
 0x49a   :  { %1096 = vmatprep.subr.bf16.mxu0 %v1262_v0 }
 0x49d   :  { %1097 = vmatpush3.bf16.msra.mxu0 %v1338_v7 }
 0x49e   :  { %1098 = vmatprep.subr.bf16.mxu0 %v1262_v0 }
 0x4a1   :  { %1099 = vmatpush3.bf16.msra.mxu0 %v1350_v9 }
 0x4a2   :  { %1100 = vmatprep.subr.bf16.mxu0 %v1262_v0 }
 0x4a5   :  { %1101 = vmatpush3.bf16.msra.mxu0 %v1360_v10 }
 0x4a6   :  { %1102 = vmatprep.subr.bf16.mxu0 %v1262_v0 }
 0x4a9   :  { %1103 = vmatpush3.bf16.msra.mxu0 %v1369_v11 }
 0x4aa   :  { %1104 = vmatprep.subr.bf16.mxu0 %v1262_v0 }
 0x4ad   :  { %1105 = vmatpush3.bf16.msra.mxu0 %v1378_v12 }
 0x4ae   :  { %1130 = vmatprep.subr.bf16.mxu0 %v1262_v0 }
 0x563   :  { %v463_v43 = vpop.f32.mrb[12].mxu0 }
 0x564   :  { %v469_v44 = vadd.f32 %v463_v43, %v140_v42  ;;  %v1068_v45 = vpop.f32.mrb[13].mxu0 }
 0x565   :  { %v466_v50 = vpop.f32.mrb[14].mxu0 }
 0x566   :  { %v471_v51 = vsub.f32 0.0, %v469_v44  ;;  %v1069_v52 = vpop.f32.mrb[15].mxu0 }
 0x568   :  { %v472_v53 = vmul.f32 1.442695, %v471_v51 }
 0x56a   :  { %1222 = vpow2.f32 %v472_v53  ;;  %v153_v53 = vadd.f32 %v1460_v46, %v1420_v18 }
 0x56b   :  { %1224 = vtanh.f32 %v469_v44 }
 0x574   :  { %v1223_v54 = vpop.eup %1222 }
 0x575   :  { %v474_v55 = vadd.f32 1.0, %v1223_v54  ;;  %v1225_v56 = vpop.eup %1224 }
 0x577   :  { %1226 = vrcp.f32 %v474_v55 }
 0x581   :  { %v1227_v57 = vpop.eup %1226 }
 0x582   :  { %v477_v58 = vsel %vm1429_vm4, %v1225_v56, %v1227_v57 }
 0x583   :  { %480 = vrot.lane.b32.xlu0 %v477_v58, %s1267_s25  ;;  %478 = vrot.lane.b32.xlu1 %v477_v58, %s1266_s0 }
 0x587   :  { %482 = vrot.lane.b32.xlu1 %v477_v58, %s1265_s24 }
 0x5f5   :  { %v481_v16 = vpop.permute.xlu0 %480  ;;  %v479_v59 = vpop.permute.xlu1 %478 }
 0x5f6   :  { %v485_v60 = vmul.f32 %v481_v16, %v477_v58  ;;  %v484_v61 = vmul.f32 %v479_v59, %v423_v37 }
 0x5f8   :  { %v486_v62 = vadd.f32 %v485_v60, %v484_v61 }
 0x5f9   :  { %v483_v3 = vpop.permute.xlu1 %482 }
 0x5fa   :  { %1228 = vtanh.f32 %v486_v62 }
 0x604   :  { %v1229_v63 = vpop.eup %1228 }
 0x605   :  { %v488_v5 = vmul.f32 %v1229_v63, %v483_v3 }
 0x607   :  { %v491_v6 = vpack.c.bf16 %v488_v5, %v488_v5 }
 0x609   :  { %1087 = vmatmul.mubr.bf16.vlgmr.msra.gmra.mrb[8].mxu1 %v491_v6 }
 0x60a   :  { %1111 = vmatpush3.bf16.msra.mxu1 %v1307_v1  ;;  %1126 = vmatprep.mubr.msk.bf16.mxu1 %vm1263_vm0, %v1262_v0 }
 0x60b   :  { %1112 = vmatprep.subr.bf16.mxu1 %v1262_v0 }
 0x60e   :  { %1113 = vmatpush3.bf16.msra.mxu1 %v1315_v2 }
 0x60f   :  { %1114 = vmatprep.subr.bf16.mxu1 %v1262_v0 }
 0x612   :  { %1115 = vmatpush3.bf16.msra.mxu1 %v1325_v4 }
 0x613   :  { %1116 = vmatprep.subr.bf16.mxu1 %v1262_v0 }
 0x616   :  { %1117 = vmatpush3.bf16.msra.mxu1 %v1338_v7 }
 0x617   :  { %1118 = vmatprep.subr.bf16.mxu1 %v1262_v0 }
 0x61a   :  { %1119 = vmatpush3.bf16.msra.mxu1 %v1350_v9 }
 0x61b   :  { %1120 = vmatprep.subr.bf16.mxu1 %v1262_v0 }
 0x61e   :  { %1121 = vmatpush3.bf16.msra.mxu1 %v1360_v10 }
 0x61f   :  { %1122 = vmatprep.subr.bf16.mxu1 %v1262_v0 }
 0x622   :  { %1123 = vmatpush3.bf16.msra.mxu1 %v1369_v11 }
 0x623   :  { %1124 = vmatprep.subr.bf16.mxu1 %v1262_v0 }
 0x626   :  { %1125 = vmatpush3.bf16.msra.mxu1 %v1378_v12 }
 0x627   :  { %1150 = vmatprep.subr.bf16.mxu1 %v1262_v0 }
 0x6dc   :  { %v526_v13 = vpop.f32.mrb[8].mxu1 }
 0x6dd   :  { %v532_v15 = vadd.f32 %v526_v13, %v145_v8  ;;  %v1088_v17 = vpop.f32.mrb[9].mxu1 }
 0x6de   :  { %v529_v19 = vpop.f32.mrb[10].mxu1 }
 0x6df   :  { %v534_v20 = vsub.f32 0.0, %v532_v15  ;;  %v1089_v21 = vpop.f32.mrb[11].mxu1 }
 0x6e0   :  { %v1190_v21 = vld [vmem:[%s1631_s4] sm:$0xff]  }
 0x6e1   :  { %v535_v22 = vmul.f32 1.442695, %v534_v20 }
 0x6e3   :  { %1230 = vpow2.f32 %v535_v22  ;;  %v1191_v22 = vld [vmem:[%s1631_s4 + $0x8] sm:$0xff]  }
 0x6e4   :  { %1232 = vtanh.f32 %v532_v15 }
 0x6ed   :  { %v1231_v23 = vpop.eup %1230 }
 0x6ee   :  { %v537_v24 = vadd.f32 1.0, %v1231_v23  ;;  %v1233_v25 = vpop.eup %1232  ;;  %v1192_v23 = vld [vmem:[%s1631_s4 + $0x10] sm:$0xff]  }
 0x6f0   :  { %1234 = vrcp.f32 %v537_v24  ;;  %v156_v24 = vadd.f32 %v1464_v48, %v1420_v18  ;;  %v1195_v48 = vld [vmem:[%s1631_s4 + $0x28] sm:$0xff]  }
 0x6fa   :  { %v1235_v26 = vpop.eup %1234 }
 0x6fb   :  { %v540_v27 = vsel %vm1429_vm4, %v1233_v25, %v1235_v26 }
 0x6fc   :  { %543 = vrot.lane.b32.xlu1 %v540_v27, %s1267_s25  ;;  %541 = vrot.lane.b32.xlu0 %v540_v27, %s1266_s0 }
 0x700   :  { %545 = vrot.lane.b32.xlu0 %v540_v27, %s1265_s24 }
 0x76e   :  { %v544_v47 = vpop.permute.xlu1 %543  ;;  %v542_v28 = vpop.permute.xlu0 %541 }
 0x76f   :  { %v548_v29 = vmul.f32 %v544_v47, %v540_v27  ;;  %v547_v30 = vmul.f32 %v542_v28, %v486_v62 }
 0x771   :  { %v549_v31 = vadd.f32 %v548_v29, %v547_v30 }
 0x772   :  { %v546_v14 = vpop.permute.xlu0 %545 }
 0x773   :  { %1236 = vtanh.f32 %v549_v31 }
 0x77d   :  { %v1237_v32 = vpop.eup %1236 }
 0x77e   :  { %v551_v34 = vmul.f32 %v1237_v32, %v546_v14  ;;  %v1193_v32 = vld [vmem:[%s1631_s4 + $0x18] sm:$0xff]  }
 0x780   :  { %v554_v35 = vpack.c.bf16 %v551_v34, %v551_v34 }
 0x782   :  { %1107 = vmatmul.mubr.bf16.vlgmr.msra.gmra.mrb[16].mxu0 %v554_v35  ;;  %v1196_v35 = vld [vmem:[%s1631_s4 + $0x30] sm:$0xff]  }
 0x783   :  { %1131 = vmatpush3.bf16.msra.mxu0 %v1307_v1  ;;  %1146 = vmatprep.mubr.msk.bf16.mxu0 %vm1263_vm0, %v1262_v0  ;;  %v148_v1 = vadd.f32 %v1420_v18, %v1466_v49  ;;  %v1194_v18 = vld [vmem:[%s1631_s4 + $0x20] sm:$0xff]  }
 0x784   :  { %1132 = vmatprep.subr.bf16.mxu0 %v1262_v0 }
 0x787   :  { %1133 = vmatpush3.bf16.msra.mxu0 %v1315_v2 }
 0x788   :  { %1134 = vmatprep.subr.bf16.mxu0 %v1262_v0 }
 0x78b   :  { %1135 = vmatpush3.bf16.msra.mxu0 %v1325_v4 }
 0x78c   :  { %1136 = vmatprep.subr.bf16.mxu0 %v1262_v0 }
 0x78f   :  { %1137 = vmatpush3.bf16.msra.mxu0 %v1338_v7 }
 0x790   :  { %1138 = vmatprep.subr.bf16.mxu0 %v1262_v0 }
 0x793   :  { %1139 = vmatpush3.bf16.msra.mxu0 %v1350_v9 }
 0x794   :  { %1140 = vmatprep.subr.bf16.mxu0 %v1262_v0 }
 0x797   :  { %1141 = vmatpush3.bf16.msra.mxu0 %v1360_v10 }
 0x798   :  { %1142 = vmatprep.subr.bf16.mxu0 %v1262_v0 }
 0x79b   :  { %1143 = vmatpush3.bf16.msra.mxu0 %v1369_v11 }
 0x79c   :  { %1144 = vmatprep.subr.bf16.mxu0 %v1262_v0 }
 0x79f   :  { %1145 = vmatpush3.bf16.msra.mxu0 %v1378_v12 }
 0x855   :  { %v589_v2 = vpop.f32.mrb[16].mxu0 }
 0x856   :  { %v595_v4 = vadd.f32 %v589_v2, %v148_v1  ;;  %v1108_v7 = vpop.f32.mrb[17].mxu0 }
 0x857   :  { %v592_v36 = vpop.f32.mrb[18].mxu0 }
 0x858   :  { %v597_v9 = vsub.f32 0.0, %v595_v4  ;;  %v1109_v37 = vpop.f32.mrb[19].mxu0 }
 0x85a   :  { %v598_v38 = vmul.f32 1.442695, %v597_v9 }
 0x85c   :  { %1238 = vpow2.f32 %v598_v38 }
 0x85d   :  { %1240 = vtanh.f32 %v595_v4  ;;  %v1197_v4 = vld [vmem:[%s1631_s4 + $0x38] sm:$0xff]  }
 0x866   :  { %v1239_v10 = vpop.eup %1238 }
 0x867   :  { %v600_v39 = vadd.f32 1.0, %v1239_v10  ;;  %v1241_v11 = vpop.eup %1240 }
 0x869   :  { %1242 = vrcp.f32 %v600_v39 }
 0x873   :  { %v1243_v40 = vpop.eup %1242 }
 0x874   :  { %v603_v12 = vsel %vm1429_vm4, %v1241_v11, %v1243_v40 }
 0x875   :  { %606 = vrot.lane.b32.xlu0 %v603_v12, %s1267_s25  ;;  %604 = vrot.lane.b32.xlu1 %v603_v12, %s1266_s0 }
 0x879   :  { %608 = vrot.lane.b32.xlu1 %v603_v12, %s1265_s24 }
 0x8e7   :  { %v607_v49 = vpop.permute.xlu0 %606  ;;  %v605_v41 = vpop.permute.xlu1 %604 }
 0x8e8   :  { %v611_v42 = vmul.f32 %v607_v49, %v603_v12  ;;  %v610_v43 = vmul.f32 %v605_v41, %v549_v31 }
 0x8ea   :  { %v612_v44 = vadd.f32 %v611_v42, %v610_v43 }
 0x8eb   :  { %v609_v50 = vpop.permute.xlu1 %608 }
 0x8ec   :  { %1244 = vtanh.f32 %v612_v44 }
 0x8f6   :  { %v1245_v45 = vpop.eup %1244 }
 0x8f7   :  { %v614_v51 = vmul.f32 %v1245_v45, %v609_v50 }
 0x8f9   :  { %v617_v52 = vpack.c.bf16 %v614_v51, %v614_v51 }
 0x8fb   :  { %1127 = vmatmul.mubr.bf16.vlgmr.msra.gmra.mrb[12].mxu1 %v617_v52 }
 0x8fc   :  { %1166 = vmatprep.mubr.msk.bf16.mxu1 %vm1263_vm0, %v1262_v0  ;;  %1151 = vmatpush3.bf16.msra.mxu1 %v1190_v21 }
 0x8fd   :  { %1152 = vmatprep.subr.bf16.mxu1 %v1262_v0 }
 0x900   :  { %1153 = vmatpush3.bf16.msra.mxu1 %v1191_v22 }
 0x901   :  { %1154 = vmatprep.subr.bf16.mxu1 %v1262_v0 }
 0x904   :  { %1155 = vmatpush3.bf16.msra.mxu1 %v1192_v23 }
 0x905   :  { %1156 = vmatprep.subr.bf16.mxu1 %v1262_v0 }
 0x908   :  { %1157 = vmatpush3.bf16.msra.mxu1 %v1193_v32 }
 0x909   :  { %1158 = vmatprep.subr.bf16.mxu1 %v1262_v0 }
 0x90c   :  { %1159 = vmatpush3.bf16.msra.mxu1 %v1194_v18 }
 0x90d   :  { %1160 = vmatprep.subr.bf16.mxu1 %v1262_v0 }
 0x910   :  { %1161 = vmatpush3.bf16.msra.mxu1 %v1195_v48 }
 0x911   :  { %1162 = vmatprep.subr.bf16.mxu1 %v1262_v0 }
 0x914   :  { %1163 = vmatpush3.bf16.msra.mxu1 %v1196_v35 }
 0x915   :  { %1164 = vmatprep.subr.bf16.mxu1 %v1262_v0  ;;  %v882_v0 = vld [vmem:[%s1632_s5] ss:$0 sm:$0xff] }
 0x918   :  { %1165 = vmatpush3.bf16.msra.mxu1 %v1197_v4 }
 0x9ce   :  { %v652_v54 = vpop.f32.mrb[12].mxu1 }
 0x9cf   :  { %v658_v55 = vadd.f32 %v652_v54, %v153_v53  ;;  %v1128_v56 = vpop.f32.mrb[13].mxu1 }
 0x9d0   :  { %v655_v57 = vpop.f32.mrb[14].mxu1 }
 0x9d1   :  { %v660_v58 = vsub.f32 0.0, %v658_v55  ;;  %v1129_v16 = vpop.f32.mrb[15].mxu1 }
 0x9d3   :  { %v661_v59 = vmul.f32 1.442695, %v660_v58 }
 0x9d5   :  { %1246 = vpow2.f32 %v661_v59 }
 0x9d6   :  { %1248 = vtanh.f32 %v658_v55 }
 0x9df   :  { %v1247_v60 = vpop.eup %1246 }
 0x9e0   :  { %v663_v61 = vadd.f32 1.0, %v1247_v60  ;;  %v1249_v62 = vpop.eup %1248 }
 0x9e2   :  { %1250 = vrcp.f32 %v663_v61 }
 0x9ec   :  { %v1251_v63 = vpop.eup %1250 }
 0x9ed   :  { %v666_v3 = vsel %vm1429_vm4, %v1249_v62, %v1251_v63 }
 0x9ee   :  { %669 = vrot.lane.b32.xlu1 %v666_v3, %s1267_s25  ;;  %667 = vrot.lane.b32.xlu0 %v666_v3, %s1266_s0 }
 0x9f2   :  { %671 = vrot.lane.b32.xlu0 %v666_v3, %s1265_s24 }
 0xa60   :  { %v670_v46 = vpop.permute.xlu1 %669  ;;  %v668_v5 = vpop.permute.xlu0 %667 }
 0xa61   :  { %v674_v6 = vmul.f32 %v670_v46, %v666_v3  ;;  %v673_v8 = vmul.f32 %v668_v5, %v612_v44 }
 0xa63   :  { %v675_v13 = vadd.f32 %v674_v6, %v673_v8 }
 0xa64   :  { %v672_v17 = vpop.permute.xlu0 %671 }
 0xa65   :  { %1252 = vtanh.f32 %v675_v13 }
 0xa6f   :  { %v1253_v15 = vpop.eup %1252 }
 0xa70   :  { %v677_v19 = vmul.f32 %v1253_v15, %v672_v17 }
 0xa72   :  { %v680_v20 = vpack.c.bf16 %v677_v19, %v677_v19 }
 0xa74   :  { %1147 = vmatmul.mubr.bf16.vlgmr.msra.gmra.mrb[20].mxu0 %v680_v20 }
 0xb47   :  { %v715_v25 = vpop.f32.mrb[20].mxu0 }
 0xb48   :  { %v721_v26 = vadd.f32 %v715_v25, %v156_v24  ;;  %v1148_v27 = vpop.f32.mrb[21].mxu0 }
 0xb49   :  { %v718_v47 = vpop.f32.mrb[22].mxu0 }
 0xb4a   :  { %v723_v28 = vsub.f32 0.0, %v721_v26  ;;  %v1149_v29 = vpop.f32.mrb[23].mxu0 }
 0xb4c   :  { %v724_v30 = vmul.f32 1.442695, %v723_v28 }
 0xb4e   :  { %1254 = vpow2.f32 %v724_v30 }
 0xb4f   :  { %1256 = vtanh.f32 %v721_v26 }
 0xb58   :  { %v1255_v31 = vpop.eup %1254 }
 0xb59   :  { %v726_v14 = vadd.f32 1.0, %v1255_v31  ;;  %v1257_v34 = vpop.eup %1256 }
 0xb5b   :  { %1258 = vrcp.f32 %v726_v14 }
 0xb65   :  { %v1259_v1 = vpop.eup %1258 }
 0xb66   :  { %v729_v2 = vsel %vm1429_vm4, %v1257_v34, %v1259_v1 }
 0xb67   :  { %732 = vrot.lane.b32.xlu0 %v729_v2, %s1267_s25  ;;  %730 = vrot.lane.b32.xlu1 %v729_v2, %s1266_s0 }
 0xb6b   :  { %734 = vrot.lane.b32.xlu1 %v729_v2, %s1265_s24 }
 0xbd9   :  { %v733_v7 = vpop.permute.xlu0 %732  ;;  %v731_v36 = vpop.permute.xlu1 %730 }
 0xbda   :  { %v737_v9 = vmul.f32 %v733_v7, %v729_v2  ;;  %v736_v37 = vmul.f32 %v731_v36, %v675_v13 }
 0xbdc   :  { %v738_v33 = vadd.f32 %v737_v9, %v736_v37 }
 0xbdd   :  { %v735_v10 = vpop.permute.xlu1 %734 }
 0xbde   :  { %1260 = vtanh.f32 %v738_v33 }
 0xbe8   :  { %v1261_v38 = vpop.eup %1260 }
 0xbe9   :  { %v740_v39 = vmul.f32 %v1261_v38, %v735_v10 }
 0xbeb   :  { %v746_v11 = vpack.c.bf16 %v740_v39, %v740_v39 }
 0xbed   :  { %1167 = vmatmul.mubr.bf16.vlgmr.msra.gmra.mrb[16].mxu1 %v746_v11 }
 0xcc0   :  { %v852_v40 = vpop.f32.mrb[16].mxu1 }
 0xcc1   :  { %v853_v12 = vadd.f32 %v882_v0, %v852_v40  ;;  %v1168_v49 = vpop.f32.mrb[17].mxu1 }
 0xcc2   :  { %v855_v41 = vpop.f32.mrb[18].mxu1 }
 0xcc3   :  { %858 = vst [vmem:[%s1633_s6] sm:$0xff] %v853_v12  ;;  %v1169_v42 = vpop.f32.mrb[19].mxu1 }

</bundles_post_ra>
